<compile_context>
chip_gen: v5e
topology: v5e:2x2
jax: 0.10.0
libtpu: 0.0.40
codegen_flags: <defaults>
</compile_context>

<pallas_src>
import jax
import jax.numpy as jnp
from jax.experimental import pallas as pl
from jax.experimental.pallas import tpu as pltpu

# ---- problem sizes (small, consistent with an NCHW conv input) ----
N, CIN, H, W = 2, 4, 16, 16
COUT, KH, KW = 8, 3, 3
PAD = 1  # 'same' padding for 3x3

LANES_IN = W * CIN          # 64  (input lanes per padded row)
LANES_OUT = W * COUT        # 128 (output lanes per row -> unmasked stores)
ROWS_PAD = H + 2 * PAD      # 18


def conv_relu_kernel(x_ref, w_ref, b_ref, o_ref):
    """One batch element per grid step.

    x_ref: (1, H+2, W*CIN)      H-padded input, channels fused into lanes
    w_ref: (KH, W*CIN, W*COUT)  banded per-kh weight matrices (W padding folded in)
    b_ref: (1, W*COUT)          bias tiled across W (lane-dense)
    o_ref: (1, H, W*COUT)       lane-dense output
    """
    xf = x_ref[0]                                                # (18, 64)
    # Bias folded into accumulator init.
    acc = jnp.broadcast_to(b_ref[...], (H, LANES_OUT)).astype(jnp.float32)
    # 3 MXU matmuls (one per kh), each (H,64) x (64,128) accumulated in f32.
    for kh in range(KH):
        acc = acc + jnp.dot(xf[kh:kh + H, :], w_ref[kh],
                            preferred_element_type=jnp.float32)
    o_ref[0] = jnp.maximum(acc, 0.0).astype(o_ref.dtype)        # ReLU + store


def _band_weights(w):
    """(COUT,CIN,KH,KW) torch layout -> (KH, W*CIN, W*COUT) banded matmul RHS.

    W_band[kh, u*CIN+cin, w*COUT+cout] = w[cout,cin,kh,u+1-w] if 0<=u+1-w<KW else 0
    (the W-direction zero padding is absorbed by simply dropping those rows).
    """
    w_hwio = jnp.transpose(w, (2, 3, 1, 0))                      # (KH,KW,CIN,COUT)
    wk = w_hwio.reshape(KH, KW * CIN, COUT)                      # (3,12,8)
    full_rows = (W + 2 * PAD) * CIN                              # 72
    cols = []
    for wc in range(W):
        top = wc * CIN
        bot = full_rows - top - KW * CIN
        cols.append(jnp.pad(wk, ((0, 0), (top, bot), (0, 0))))   # (3,72,8)
    w_full = jnp.concatenate(cols, axis=-1)                      # (3,72,128)
    return w_full[:, CIN:CIN + W * CIN, :]                       # (3,64,128)


def _forward_impl(x_nchw, w, b):
    # Layout glue: NCHW -> (N, H, W*CIN) with channels minor on the lane axis;
    # pad along H only (W padding lives inside the banded weight matrix).
    xf = jnp.transpose(x_nchw, (0, 2, 3, 1)).reshape(N, H, LANES_IN)
    xf = jnp.pad(xf, ((0, 0), (PAD, PAD), (0, 0)))               # (N,18,64)
    w_band = _band_weights(w)                                    # (3,64,128)
    b_row = jnp.tile(b, W).reshape(1, LANES_OUT)                 # (1,128)

    out = pl.pallas_call(
        conv_relu_kernel,
        out_shape=jax.ShapeDtypeStruct((N, H, LANES_OUT), jnp.float32),
        grid=(N,),
        in_specs=[
            pl.BlockSpec((1, ROWS_PAD, LANES_IN), lambda n: (n, 0, 0)),
            pl.BlockSpec((KH, LANES_IN, LANES_OUT), lambda n: (0, 0, 0)),
            pl.BlockSpec((1, LANES_OUT), lambda n: (0, 0)),
        ],
        out_specs=pl.BlockSpec((1, H, LANES_OUT), lambda n: (n, 0, 0)),
        compiler_params=pltpu.CompilerParams(
            dimension_semantics=("parallel",)),
    )(xf, w_band, b_row)

    # (N, H, W*COUT) -> NCHW
    return jnp.transpose(out.reshape(N, H, W, COUT), (0, 3, 1, 2))


script_forward = jax.jit(_forward_impl)


def reference_forward(x_nchw, w, b):
    """Pure-JAX reference (lax conv) for correctness check."""
    y = jax.lax.conv_general_dilated(
        x_nchw, w,
        window_strides=(1, 1),
        padding=((PAD, PAD), (PAD, PAD)),
        dimension_numbers=("NCHW", "OIHW", "NCHW"),
    )
    y = y + b.reshape(1, COUT, 1, 1)
    return jnp.maximum(y, 0.0)


if __name__ == "__main__":
    key = jax.random.PRNGKey(0)
    kx, kw, kb = jax.random.split(key, 3)

    x = jax.random.normal(kx, (N, CIN, H, W), dtype=jnp.float32)
    # Deterministic parameter init (synthetic; not a checkpoint load).
    w = jax.random.normal(kw, (COUT, CIN, KH, KW), dtype=jnp.float32) * 0.1
    b = jax.random.normal(kb, (COUT,), dtype=jnp.float32) * 0.1

    out = jax.block_until_ready(script_forward(x, w, b))
    ref = jax.block_until_ready(reference_forward(x, w, b))

    assert out.shape == (N, COUT, H, W)
    assert jnp.allclose(out, ref, atol=1e-4, rtol=1e-4), (
        float(jnp.max(jnp.abs(out - ref)))
    )
    print("KERNEL_OK")
</pallas_src>

<mosaic_0001>
module attributes {stable_mosaic.version = 11 : i64} {
  func.func @conv_relu_kernel(%arg0: i32, %arg1: memref<1x18x64xf32, #tpu.memory_space<vmem>>, %arg2: memref<3x64x128xf32, #tpu.memory_space<vmem>>, %arg3: memref<1x128xf32, #tpu.memory_space<vmem>>, %arg4: memref<1x16x128xf32, #tpu.memory_space<vmem>>) attributes {dimension_semantics = [#tpu.dimension_semantics<parallel>], iteration_bounds = array<i64: 2>, scalar_prefetch = 0 : i64, scratch_operands = 0 : i64, tpu.core_type = #tpu.core_type<tc>, window_params = [{transform_indices = @transform_0, window_bounds = array<i64: 1, 18, 64>}, {pipeline_mode = #tpu.pipeline_mode<synchronous>, transform_indices = @transform_1, window_bounds = array<i64: 3, 64, 128>}, {pipeline_mode = #tpu.pipeline_mode<synchronous>, transform_indices = @transform_2, window_bounds = array<i64: 1, 128>}, {transform_indices = @transform_3, window_bounds = array<i64: 1, 16, 128>}]} {
    %c0 = arith.constant 0 : index
    %c0_0 = arith.constant 0 : index
    %c0_1 = arith.constant 0 : index
    %0 = vector.load %arg1[%c0, %c0_0, %c0_1] : memref<1x18x64xf32, #tpu.memory_space<vmem>>, vector<1x18x64xf32>
    %1 = vector.shape_cast %0 : vector<1x18x64xf32> to vector<18x64xf32>
    %c0_2 = arith.constant 0 : index
    %c0_3 = arith.constant 0 : index
    %2 = vector.load %arg3[%c0_2, %c0_3] : memref<1x128xf32, #tpu.memory_space<vmem>>, vector<1x128xf32>
    %3 = vector.shape_cast %2 : vector<1x128xf32> to vector<1x128xf32>
    %4 = vector.broadcast %3 : vector<1x128xf32> to vector<16x128xf32>
    %5 = vector.extract_strided_slice %1 {offsets = [0, 0], sizes = [16, 64], strides = [1, 1]} : vector<18x64xf32> to vector<16x64xf32>
    %c0_4 = arith.constant 0 : index
    %c0_5 = arith.constant 0 : index
    %c0_6 = arith.constant 0 : index
    %6 = vector.load %arg2[%c0_4, %c0_5, %c0_6] : memref<3x64x128xf32, #tpu.memory_space<vmem>>, vector<1x64x128xf32>
    %7 = vector.shape_cast %6 : vector<1x64x128xf32> to vector<64x128xf32>
    %cst = arith.constant dense<0.000000e+00> : vector<16x128xf32>
    %8 = tpu.matmul %5, %7, %cst {dimension_numbers = #tpu.dot_dimension_numbers<[1], [0], [0], [1], [0, 0, 1, 1], [], []>} : vector<16x64xf32>, vector<64x128xf32>, vector<16x128xf32> -> vector<16x128xf32>
    %9 = arith.addf %4, %8 : vector<16x128xf32>
    %10 = vector.extract_strided_slice %1 {offsets = [1, 0], sizes = [16, 64], strides = [1, 1]} : vector<18x64xf32> to vector<16x64xf32>
    %c1 = arith.constant 1 : index
    %c0_7 = arith.constant 0 : index
    %c0_8 = arith.constant 0 : index
    %11 = vector.load %arg2[%c1, %c0_7, %c0_8] : memref<3x64x128xf32, #tpu.memory_space<vmem>>, vector<1x64x128xf32>
    %12 = vector.shape_cast %11 : vector<1x64x128xf32> to vector<64x128xf32>
    %cst_9 = arith.constant dense<0.000000e+00> : vector<16x128xf32>
    %13 = tpu.matmul %10, %12, %cst_9 {dimension_numbers = #tpu.dot_dimension_numbers<[1], [0], [0], [1], [0, 0, 1, 1], [], []>} : vector<16x64xf32>, vector<64x128xf32>, vector<16x128xf32> -> vector<16x128xf32>
    %14 = arith.addf %9, %13 : vector<16x128xf32>
    %15 = vector.extract_strided_slice %1 {offsets = [2, 0], sizes = [16, 64], strides = [1, 1]} : vector<18x64xf32> to vector<16x64xf32>
    %c2 = arith.constant 2 : index
    %c0_10 = arith.constant 0 : index
    %c0_11 = arith.constant 0 : index
    %16 = vector.load %arg2[%c2, %c0_10, %c0_11] : memref<3x64x128xf32, #tpu.memory_space<vmem>>, vector<1x64x128xf32>
    %17 = vector.shape_cast %16 : vector<1x64x128xf32> to vector<64x128xf32>
    %cst_12 = arith.constant dense<0.000000e+00> : vector<16x128xf32>
    %18 = tpu.matmul %15, %17, %cst_12 {dimension_numbers = #tpu.dot_dimension_numbers<[1], [0], [0], [1], [0, 0, 1, 1], [], []>} : vector<16x64xf32>, vector<64x128xf32>, vector<16x128xf32> -> vector<16x128xf32>
    %19 = arith.addf %14, %18 : vector<16x128xf32>
    %cst_13 = arith.constant 0.000000e+00 : f32
    %20 = vector.broadcast %cst_13 : f32 to vector<16x128xf32>
    %21 = arith.maximumf %19, %20 : vector<16x128xf32>
    %c0_14 = arith.constant 0 : index
    %c0_15 = arith.constant 0 : index
    %c0_16 = arith.constant 0 : index
    %22 = vector.load %arg4[%c0_14, %c0_15, %c0_16] : memref<1x16x128xf32, #tpu.memory_space<vmem>>, vector<1x16x128xf32>
    %23 = vector.shape_cast %22 : vector<1x16x128xf32> to vector<16x128xf32>
    %24 = vector.shape_cast %21 : vector<16x128xf32> to vector<1x16x128xf32>
    tpu.vector_store %arg4[%c0_14, %c0_15, %c0_16], %24 {strides = array<i32>} : memref<1x16x128xf32, #tpu.memory_space<vmem>>, vector<1x16x128xf32>,
    return
  }
  func.func @transform_0(%arg0: i32) -> (i32, i32, i32) {
    %c0_i32 = arith.constant 0 : i32
    %c0_i32_0 = arith.constant 0 : i32
    %c0_i32_1 = arith.constant 0 : i32
    return %arg0, %c0_i32, %c0_i32_0 : i32, i32, i32
  }
  func.func @transform_1(%arg0: i32) -> (i32, i32, i32) {
    %c0_i32 = arith.constant 0 : i32
    %c0_i32_0 = arith.constant 0 : i32
    %c0_i32_1 = arith.constant 0 : i32
    %c0_i32_2 = arith.constant 0 : i32
    return %c0_i32, %c0_i32_0, %c0_i32_1 : i32, i32, i32
  }
  func.func @transform_2(%arg0: i32) -> (i32, i32) {
    %c0_i32 = arith.constant 0 : i32
    %c0_i32_0 = arith.constant 0 : i32
    %c0_i32_1 = arith.constant 0 : i32
    return %c0_i32, %c0_i32_0 : i32, i32
  }
  func.func @transform_3(%arg0: i32) -> (i32, i32, i32) {
    %c0_i32 = arith.constant 0 : i32
    %c0_i32_0 = arith.constant 0 : i32
    %c0_i32_1 = arith.constant 0 : i32
    return %arg0, %c0_i32, %c0_i32_0 : i32, i32, i32
  }
}

</mosaic_0001>

<bundles_post_ra>
// kernel: tile.8
= control target key start
LH: loop header
LB: loop body
LE: loop exit
PB: predicated region body
PF: predicated region fallthrough
CT: control target
= control target key end

     0   :  { %s28_s0 = inlined_call_operand.vmem [shape: f32[8], index: 0, kind: input, shape index: {}]   ;;  %s29_s1 = inlined_call_operand.vmem [shape: f32[16,8], index: 1, kind: output, shape index: {}]  }
   0x1   :  { %v4_v0 = vld [vmem:[%s28_s0] ss:$0 sm:$0xff] }
   0x2   :  { %5 = vst [vmem:[%s29_s1] sm:$0xff] %v4_v0 }
   0x3   :  { %8 = vst [vmem:[%s29_s1 + $0x8] sm:$0xff] %v4_v0 }

// kernel: tile.9
= control target key start
LH: loop header
LB: loop body
LE: loop exit
PB: predicated region body
PF: predicated region fallthrough
CT: control target
= control target key end

     0   :  { %s131_s10 = smov 120   ;;  %s132_s11 = smov 104   ;;  %vm3_vm0 = vcmask 64512   ;;  %vm9_vm1 = vcmask 1048512   ;;  %vm15_vm2 = vcmask 982912   ;;  %vm21_vm3 = vcmask 917312   ;;  %s207_s0 = inlined_call_operand.vmem [shape: f32[16,8], index: 0, kind: input, shape index: {}]   ;;  %s208_s1 = inlined_call_operand.vmem [shape: f32[1,128], index: 1, kind: output, shape index: {}]  }
   0x1   :  { %v101_v0 = vld [vmem:[%s207_s0 + $0xf] sm:$0x1]   ;;  %v103_v1 = vld [vmem:[%s207_s0 + $0xd] sm:$0x1]   ;;  %v105_v2 = vld [vmem:[%s207_s0 + $0xb] sm:$0x1]  }
   0x2   :  { %7 = vrot.lane.b32.xlu0 %v101_v0, %s131_s10  ;;  %19 = vrot.lane.b32.xlu1 %v103_v1, %s132_s11  ;;  %s133_s14 = smov 88   ;;  %v102_v3 = vld [vmem:[%s207_s0 + $0xe] sm:$0x1]   ;;  %v104_v4 = vld [vmem:[%s207_s0 + $0xc] sm:$0x1]   ;;  %s134_s19 = smov 112  }
   0x3   :  { %31 = vrot.lane.b32.xlu2 %v105_v2, %s133_s14  ;;  %s135_s20 = smov 96   ;;  %v106_v5 = vld [vmem:[%s207_s0 + $0xa] sm:$0x1]   ;;  %s136_s23 = smov 80   ;;  %v107_v6 = vld [vmem:[%s207_s0 + $0x9] sm:$0x1]  }
   0x4   :  { %v108_v7 = vld [vmem:[%s207_s0 + $0x8] sm:$0x1]   ;;  %s137_s28 = smov 72   ;;  %s138_s29 = smov 64   ;;  %v109_v8 = vld [vmem:[%s207_s0 + $0x7] sm:$0x1]  }
   0x5   :  { %s139_s3 = smov 56   ;;  %v110_v9 = vld [vmem:[%s207_s0 + $0x6] sm:$0x1]   ;;  %v111_v10 = vld [vmem:[%s207_s0 + $0x5] sm:$0x1]   ;;  %s140_s8 = smov 48  }
   0x6   :  { %s141_s9 = smov 40   ;;  %v112_v11 = vld [vmem:[%s207_s0 + $0x4] sm:$0x1]   ;;  %s142_s12 = smov 32   ;;  %v113_v12 = vld [vmem:[%s207_s0 + $0x3] sm:$0x1]  }
   0x7   :  { %v114_v13 = vld [vmem:[%s207_s0 + $0x2] sm:$0x1]   ;;  %s143_s17 = smov 24   ;;  %s144_s18 = smov 16   ;;  %v115_v14 = vld [vmem:[%s207_s0 + $0x1] sm:$0x1]  }
   0x8   :  { %s145_s21 = smov 8   ;;  %v2_v15 = vld [vmem:[%s207_s0] sm:$0x1]   ;;  %vm27_vm4 = vcmask 851712   ;;  %vm33_vm5 = vcmask 786112   ;;  %vm39_vm6 = vcmask 720512  }
   0x9   :  { %4 = vst.msk [vmem:[#allocation0] sm:$0x1] %vm3_vm0, %v2_v15   ;;  %vm45_vm7 = vcmask 654912   ;;  %vm51_vm8 = vcmask 589312   ;;  %vm57_vm9 = vcmask 523712   ;;  %vm63_vm10 = vcmask 458112  }
   0xa   :  { %13 = vrot.lane.b32.xlu0 %v102_v3, %s134_s19  ;;  %25 = vrot.lane.b32.xlu1 %v104_v4, %s135_s20  ;;  %vm69_vm11 = vcmask 392512   ;;  %vm75_vm12 = vcmask 326912   ;;  %vm81_vm13 = vcmask 261312   ;;  %vm87_vm14 = vcmask 195712  }
   0xb   :  { %37 = vrot.lane.b32.xlu2 %v106_v5, %s136_s23  ;;  %vm93_vm15 = vcmask 130112  }
  0x12   :  { %43 = vrot.lane.b32.xlu0 %v107_v6, %s137_s28  ;;  %49 = vrot.lane.b32.xlu1 %v108_v7, %s138_s29 }
  0x13   :  { %55 = vrot.lane.b32.xlu2 %v109_v8, %s139_s3 }
  0x1a   :  { %61 = vrot.lane.b32.xlu0 %v110_v9, %s140_s8  ;;  %67 = vrot.lane.b32.xlu1 %v111_v10, %s141_s9 }
  0x1b   :  { %73 = vrot.lane.b32.xlu2 %v112_v11, %s142_s12 }
  0x22   :  { %79 = vrot.lane.b32.xlu0 %v113_v12, %s143_s17  ;;  %85 = vrot.lane.b32.xlu1 %v114_v13, %s144_s18 }
  0x23   :  { %91 = vrot.lane.b32.xlu2 %v115_v14, %s145_s21 }
  0x5d   :  { %v32_v16 = vpop.permute.xlu2 %31  }
  0x65   :  { %v38_v17 = vpop.permute.xlu2 %37  }
  0x6d   :  { %v56_v18 = vpop.permute.xlu2 %55  }
  0x74   :  { %v8_v19 = vpop.permute.xlu0 %7   ;;  %v20_v20 = vpop.permute.xlu1 %19  }
  0x75   :  { %10 = vst.msk [vmem:[#allocation0] sm:$0x1] %vm9_vm1, %v8_v19   ;;  %v74_v21 = vpop.permute.xlu2 %73  }
  0x7c   :  { %v14_v22 = vpop.permute.xlu0 %13   ;;  %v26_v23 = vpop.permute.xlu1 %25  }
  0x7d   :  { %16 = vst.msk [vmem:[#allocation0] sm:$0x1] %vm15_vm2, %v14_v22   ;;  %v92_v24 = vpop.permute.xlu2 %91  }
  0x7e   :  { %22 = vst.msk [vmem:[#allocation0] sm:$0x1] %vm21_vm3, %v20_v20  }
  0x7f   :  { %28 = vst.msk [vmem:[#allocation0] sm:$0x1] %vm27_vm4, %v26_v23  }
  0x80   :  { %34 = vst.msk [vmem:[#allocation0] sm:$0x1] %vm33_vm5, %v32_v16  }
  0x81   :  { %40 = vst.msk [vmem:[#allocation0] sm:$0x1] %vm39_vm6, %v38_v17  }
  0x84   :  { %v44_v25 = vpop.permute.xlu0 %43   ;;  %v50_v26 = vpop.permute.xlu1 %49  }
  0x85   :  { %46 = vst.msk [vmem:[#allocation0] sm:$0x1] %vm45_vm7, %v44_v25  }
  0x86   :  { %52 = vst.msk [vmem:[#allocation0] sm:$0x1] %vm51_vm8, %v50_v26  }
  0x87   :  { %58 = vst.msk [vmem:[#allocation0] sm:$0x1] %vm57_vm9, %v56_v18  }
  0x8c   :  { %v62_v27 = vpop.permute.xlu0 %61   ;;  %v68_v28 = vpop.permute.xlu1 %67  }
  0x8d   :  { %64 = vst.msk [vmem:[#allocation0] sm:$0x1] %vm63_vm10, %v62_v27  }
  0x8e   :  { %70 = vst.msk [vmem:[#allocation0] sm:$0x1] %vm69_vm11, %v68_v28  }
  0x8f   :  { %76 = vst.msk [vmem:[#allocation0] sm:$0x1] %vm75_vm12, %v74_v21  }
  0x94   :  { %v80_v29 = vpop.permute.xlu0 %79   ;;  %v86_v30 = vpop.permute.xlu1 %85  }
  0x95   :  { %82 = vst.msk [vmem:[#allocation0] sm:$0x1] %vm81_vm13, %v80_v29  }
  0x96   :  { %88 = vst.msk [vmem:[#allocation0] sm:$0x1] %vm87_vm14, %v86_v30  }
  0x97   :  { %94 = vst.msk [vmem:[#allocation0] sm:$0x1] %vm93_vm15, %v92_v24  }
  0x9e   :  { %v97_v31 = vld [vmem:[#allocation0] sm:$0x1] }
  0x9f   :  { %100 = vst [vmem:[%s208_s1] sm:$0x1] %v97_v31 }

// kernel: _forward_impl.1
= control target key start
LH: loop header
LB: loop body
LE: loop exit
PB: predicated region body
PF: predicated region fallthrough
CT: control target
= control target key end

     0   :  { %s445_s12 = smov 0   ;;  %s556_s0 = inlined_call_operand.vmem [shape: f32[2,18,64], index: 0, kind: input, shape index: {}]   ;;  %s557_s1 = inlined_call_operand.vmem [shape: f32[3,64,128], index: 1, kind: input, shape index: {}]   ;;  %s558_s2 = inlined_call_operand.vmem [shape: f32[1,128], index: 2, kind: input, shape index: {}]   ;;  %s559_s3 = inlined_call_operand.vmem [shape: f32[2,16,128], index: 3, kind: output, shape index: {}]  }
   0x1 LB: > { %s366_s13 = sadd.s32 4294967295, %s423_s12   ;;  %p370_p0 = scmp.ge.s32.totalorder %s423_s12, 1  ;;  %s423_s12 = sphi %s445_s12, %s13_s12  }
   0x2   : > { %p137_p1 = scmp.lt.s32.totalorder %s423_s12, 3 }
   0x4   : > { %p138_p2 = pnand %p370_p0, %p137_p1 }
   0x5   : > { %p161_p3 = scmp.lt.s32.totalorder (!%p138_p2), %s366_s13, 1 }
   0x6   : > { %141 = sbr.rel (%p138_p2) target bundleno = 172 (0xac), region = 32 }
   0xb   : > { %v393_v0 = vld [vmem:[%s557_s1 + $0xb8] sm:$0xff]  ;;  %v392_v2 = vld [vmem:[%s557_s1 + $0xb0] sm:$0xff]  ;;  %v391_v5 = vld [vmem:[%s557_s1 + $0xa8] sm:$0xff]  ;;  %s561_s13 = smov (!%p161_p3, %s366_s13), 1  ;;  %vm272_vm0 = vcmask 1045504   ;;  %vm228_vm1 = vcmask 1046528  }
   0xc   : > { %v185_v1 = vld [vmem:[%s557_s1 + $0x38] sm:$0xff]  ;;  %290 = vmatpush.msra.mxu2 %v393_v0  ;;  %v184_v3 = vld [vmem:[%s557_s1 + $0x30] sm:$0xff]  ;;  %v183_v6 = vld [vmem:[%s557_s1 + $0x28] sm:$0xff]  ;;  %s407_s9 = smul.u32 24, %s561_s13  ;;  %vm186_vm2 = vcmask 523264   ;;  %s398_s18 = sshll.u32 %s561_s13, 4 }
   0xd   : > { %201 = vmatpush.msra.mxu0 %v185_v1  ;;  %v383_v4 = vld [vmem:[%s557_s1 + $0x78] sm:$0xff]  ;;  %399 = vmatpush.msra.mxu3 %v185_v1  ;;  %v382_v7 = vld [vmem:[%s557_s1 + $0x70] sm:$0xff]  ;;  %v381_v8 = vld [vmem:[%s557_s1 + $0x68] sm:$0xff]  ;;  %s170_s21 = scalar_lea.vmem %s559_s3, %s398_s18 }
   0xe   : > { %246 = vmatpush.msra.mxu1 %v383_v4  ;;  %291 = vmatpush.msra.mxu2 %v392_v2  ;;  %v390_v9 = vld [vmem:[%s557_s1 + $0xa0] sm:$0xff]  ;;  %v389_v12 = vld [vmem:[%s557_s1 + $0x98] sm:$0xff]  ;;  %s501_s20 = scalar_lea.vmem %s556_s0, %s407_s9  ;;  %v388_v17 = vld [vmem:[%s557_s1 + $0x90] sm:$0xff] }
   0xf   : > { %202 = vmatpush.msra.mxu0 %v184_v3  ;;  %400 = vmatpush.msra.mxu3 %v184_v3  ;;  %v182_v10 = vld [vmem:[%s557_s1 + $0x20] sm:$0xff]  ;;  %v181_v13 = vld [vmem:[%s557_s1 + $0x18] sm:$0xff]  ;;  %v172_v16 = vld [vmem:[%s501_s20 + $0x8] sm:$0xff] }
  0x10   : > { %247 = vmatpush.msra.mxu1 %v382_v7  ;;  %292 = vmatpush.msra.mxu2 %v391_v5  ;;  %v380_v11 = vld [vmem:[%s557_s1 + $0x60] sm:$0xff]  ;;  %v379_v14 = vld [vmem:[%s557_s1 + $0x58] sm:$0xff]  ;;  %v180_v18 = vld [vmem:[%s557_s1 + $0x10] sm:$0xff]  ;;  %v274_v21 = vrot.slane %v172_v16, 2  ;;  %v230_v26 = vrot.slane %v172_v16, 1 }
  0x11   : > { %203 = vmatpush.msra.mxu0 %v183_v6  ;;  %401 = vmatpush.msra.mxu3 %v183_v6  ;;  %v171_v15 = vld [vmem:[%s501_s20] sm:$0xff]  ;;  %v378_v19 = vld [vmem:[%s557_s1 + $0x50] sm:$0xff]  ;;  %v387_v22 = vld [vmem:[%s557_s1 + $0x88] sm:$0xff] }
  0x12   : > { %248 = vmatpush.msra.mxu1 %v381_v8  ;;  %293 = vmatpush.msra.mxu2 %v390_v9  ;;  %v273_v20 = vrot.slane %v171_v15, 2  ;;  %v179_v23 = vld [vmem:[%s557_s1 + $0x8] sm:$0xff]  ;;  %v229_v25 = vrot.slane %v171_v15, 1  ;;  %v386_v27 = vld [vmem:[%s557_s1 + $0x80] sm:$0xff]  ;;  %v173_v31 = vld [vmem:[%s501_s20 + $0x10] sm:$0x3] }
  0x13   : > { %204 = vmatpush.msra.mxu0 %v182_v10  ;;  %402 = vmatpush.msra.mxu3 %v182_v10  ;;  %v377_v24 = vld [vmem:[%s557_s1 + $0x48] sm:$0xff]  ;;  %v178_v28 = vld [vmem:[%s557_s1] sm:$0xff]  ;;  %v276_v33 = vrot.slane %v173_v31, 2  ;;  %v232_v34 = vrot.slane %v173_v31, 1 }
  0x14   : > { %249 = vmatpush.msra.mxu1 %v380_v11  ;;  %294 = vmatpush.msra.mxu2 %v389_v12  ;;  %v275_v29 = vsel %vm272_vm0, %v273_v20, %v274_v21  ;;  %v376_v30 = vld [vmem:[%s557_s1 + $0x40] sm:$0xff]  ;;  %v231_v32 = vsel %vm228_vm1, %v229_v25, %v230_v26 }
  0x15   : > { %205 = vmatpush.msra.mxu0 %v181_v13  ;;  %403 = vmatpush.msra.mxu3 %v181_v13  ;;  %v277_v35 = vsel %vm272_vm0, %v274_v21, %v276_v33  ;;  %v233_v36 = vsel %vm228_vm1, %v230_v26, %v232_v34  ;;  %v416_v37 = vld [vmem:[%s558_s2] ss:$0 sm:$0xff] }
  0x16   : > { %250 = vmatpush.msra.mxu1 %v379_v14  ;;  %295 = vmatpush.msra.mxu2 %v388_v17 }
  0x17   : > { %206 = vmatpush.msra.mxu0 %v180_v18  ;;  %404 = vmatpush.msra.mxu3 %v180_v18 }
  0x18   : > { %251 = vmatpush.msra.mxu1 %v378_v19  ;;  %296 = vmatpush.msra.mxu2 %v387_v22 }
  0x19   : > { %207 = vmatpush.msra.mxu0 %v179_v23  ;;  %405 = vmatpush.msra.mxu3 %v179_v23 }
  0x1a   : > { %252 = vmatpush.msra.mxu1 %v377_v24  ;;  %297 = vmatpush.msra.mxu2 %v386_v27 }
  0x1b   : > { %208 = vmatpush.msra.mxu0 %v178_v28  ;;  %394 = vmatmul.msk.f32.vlgmr.msra.gmra.mxu2 %vm186_vm2, %v275_v29 }
  0x1c   : > { %374 = vmatmul.msk.f32.vlgmr.msra.gmra.mxu0 %vm186_vm2, %v171_v15  ;;  %406 = vmatpush.msra.mxu3 %v178_v28 }
  0x1d   : > { %253 = vmatpush.msra.mxu1 %v376_v30  ;;  %375 = vmatmul.msk.f32.vlgmr.msra.gmra.mxu3 %vm186_vm2, %v172_v16 }
  0x1e   : > { %384 = vmatmul.msk.f32.vlgmr.msra.gmra.mxu1 %vm186_vm2, %v231_v32 }
  0x23   : > { %395 = vmatmul.msk.f32.gmra.mxu2 %vm186_vm2, %v277_v35 }
  0x26   : > { %385 = vmatmul.msk.f32.gmra.mxu1 %vm186_vm2, %v233_v36 }
  0x99   : > { %v210_v38 = vpop.f32.mrf.mxu0 }
  0x9a   : > { %v216_v39 = vadd.f32 %v416_v37, %v210_v38 }
  0x9b   : > { %v255_v40 = vpop.f32.mrf.mxu1 }
  0x9c   : > { %v261_v41 = vadd.f32 %v255_v40, %v216_v39 }
  0x9e   : > { %v299_v42 = vpop.f32.mrf.mxu2 }
  0x9f   : > { %v305_v43 = vadd.f32 %v299_v42, %v261_v41 }
  0xa0   : > { %v213_v44 = vpop.f32.mrf.mxu3 }
  0xa1   : > { %v307_v45 = vmax.f32 %v305_v43, 0.0  ;;  %v217_v46 = vadd.f32 %v416_v37, %v213_v44 }
  0xa3   : > { %v258_v47 = vpop.f32.mrf.mxu1  ;;  %309 = vst [vmem:[%s170_s21] sm:$0xff] %v307_v45 }
  0xa4   : > { %v262_v48 = vadd.f32 %v258_v47, %v217_v46 }
  0xa6   : > { %v302_v49 = vpop.f32.mrf.mxu2 }
  0xa7   : > { %v306_v50 = vadd.f32 %v302_v49, %v262_v48 }
  0xa9   : > { %v308_v51 = vmax.f32 %v306_v50, 0.0 }
  0xab   : > { %310 = vst [vmem:[%s170_s21 + $0x8] sm:$0xff] %v308_v51 }
  0xac PF: > { %s13_s12 = sadd.s32 1, %s423_s12  }
  0xad   : > { %p10_p4 = scmp.ge.s32.totalorder %s13_s12, 4  }
  0xaf   :  { %12 = sbr.rel (!%p10_p4) target bundleno = 1 (0x1), region = 64 }

</bundles_post_ra>
